<compile_context>
chip_gen: v6e
topology: v6e:2x2x1
jax: 0.10.0
libtpu: 0.0.40
codegen_flags: <defaults>
</compile_context>

<pallas_src>
import numpy as np
import jax
import jax.numpy as jnp
from jax.experimental import pallas as pl
from jax.experimental.pallas import tpu as pltpu


# ------------------------------ Pallas kernel ---------------------------------
def _agcrn_cell_kernel(x_ref, s_ref, sall_ref, wg_ref, wu_ref, bg_ref, bu_ref,
                       h_ref):
    """One batch block of the AGCRN cell.

    x_ref:    (Bt, N, Din)                s_ref: (Bt, N, H)
    sall_ref: (2K*N, N)    row-stacked Chebyshev supports       (bf16)
    wg_ref:   (2K*(Din+H), 2H)  gate weights, rows [x k-major | state k-major] (bf16)
    wu_ref:   (2K*(Din+H), H)   update weights, same row order                 (bf16)
    bg_ref:   (1, 2H)  f32      bu_ref: (1, H)  f32
    h_ref:    (Bt*N, H)         new hidden state (flat batch*node rows)
    """
    Bt, N, Din = x_ref.shape
    H = s_ref.shape[2]
    K2 = sall_ref.shape[0] // N
    mx = sall_ref.dtype                      # MXU operand dtype (bf16)

    sall = sall_ref[...]                     # (K2*N, N)

    # ---- fold the batch: lanes for stage 1, rows for stage 2 / gating -------
    x_list = [x_ref[b] for b in range(Bt)]                        # (N, Din) each
    s_list = [s_ref[b] for b in range(Bt)]                        # (N, H)   each
    Xf = jnp.concatenate(x_list, axis=-1) if Bt > 1 else x_list[0]   # (N, Bt*Din)
    Sf = jnp.concatenate(s_list, axis=-1) if Bt > 1 else s_list[0]   # (N, Bt*H)
    s2d = (jnp.concatenate(s_list, axis=0) if Bt > 1 else s_list[0]
           ).astype(jnp.float32)                                     # (Bt*N, H)

    # ---- stage 1 (gate path): ONE wide dot over all 2K supports --------------
    rhs = jnp.concatenate([Xf, Sf], axis=-1).astype(mx)           # (N, Bt*(Din+H))
    G = jnp.dot(sall, rhs, preferred_element_type=jnp.float32)    # (K2*N, Bt*Din+Bt*H)
    GX = G[:, :Bt * Din]                                          # S_k @ x_b
    GS = G[:, Bt * Din:]                                          # S_k @ state_b

    def regroup(Y, W):
        # (K2*N, Bt*W) rows [k,n] / lanes [b,c]  ->  (Bt*N, K2*W) rows [b,n] / lanes [k,c]
        rows = []
        for b in range(Bt):
            rows.append(jnp.concatenate(
                [Y[k * N:(k + 1) * N, b * W:(b + 1) * W] for k in range(K2)],
                axis=-1))
        return jnp.concatenate(rows, axis=0) if Bt > 1 else rows[0]

    XG = regroup(GX, Din)                                         # (Bt*N, K2*Din)
    SG = regroup(GS, H)                                           # (Bt*N, K2*H)

    # ---- stage 2: fused z|r gate, single K = K2*(Din+H) contraction ----------
    xg = jnp.concatenate([XG, SG], axis=-1).astype(mx)            # (Bt*N, K2*Cin)
    zr = jax.nn.sigmoid(
        jnp.dot(xg, wg_ref[...], preferred_element_type=jnp.float32)
        + bg_ref[...])                                            # (Bt*N, 2H)
    z = zr[:, :H]
    r = zr[:, H:]

    # ---- candidate: reuse S@x (XG); only S@(z*state) is new -------------------
    c2d = z * s2d                                                 # (Bt*N, H)
    Cf = (jnp.concatenate([c2d[b * N:(b + 1) * N, :] for b in range(Bt)], axis=-1)
          if Bt > 1 else c2d).astype(mx)                          # (N, Bt*H)
    GC = jnp.dot(sall, Cf, preferred_element_type=jnp.float32)    # (K2*N, Bt*H)
    CG = regroup(GC, H)                                           # (Bt*N, K2*H)
    xc = jnp.concatenate([XG, CG], axis=-1).astype(mx)            # (Bt*N, K2*Cin)
    hc = jnp.tanh(
        jnp.dot(xc, wu_ref[...], preferred_element_type=jnp.float32)
        + bu_ref[...])                                            # (Bt*N, H)

    # ---- GRU combine + single slab store --------------------------------------
    h2d = r * s2d + (1.0 - r) * hc                                # (Bt*N, H)
    h_ref[...] = h2d.astype(h_ref.dtype)


# ------------------------------ wrapper / setup --------------------------------
def build_cheb_supports(supports, cheb_k):
    """Chebyshev expansion [I, S, 2S T_{k-1} - T_{k-2}, ...] for supports[:2]."""
    # The module's weight sizing (2*cheb_k*dim_in rows) requires exactly cheb_k
    # terms per support; the expansion always emits at least [I, S], so cheb_k>=2.
    assert cheb_k >= 2, "AGCN requires cheb_k >= 2 (expansion emits [I, S, ...])"
    n = supports[0].shape[0]
    eye = jnp.eye(n, dtype=supports[0].dtype)
    out = []
    for sup in supports[:2]:
        ks = [eye, sup]
        for _ in range(2, cheb_k):
            ks.append(2.0 * jnp.matmul(sup, ks[-1]) - ks[-2])
        out.extend(ks)
    return jnp.stack(out, axis=0)                     # (2*cheb_k, N, N)


def prepare_agcrn_params(supports, params, cheb_k, dim_in, hidden_dim,
                         matmul_dtype=jnp.bfloat16):
    """Batch-independent setup (hoist out of any per-timestep scan):
    Chebyshev expansion, support row-stacking, k-major weight re-ordering,
    bf16 casts."""
    H, Din = hidden_dim, dim_in
    Cin = Din + H
    K2 = 2 * cheb_k
    sup = build_cheb_supports(supports, cheb_k)                   # (K2, N, N)
    N = sup.shape[-1]
    s_all = sup.reshape(K2 * N, N).astype(matmul_dtype)           # row-stacked

    def reorder_kmajor(w, out_dim):
        # Original rows are [k*Cin + c] with c = [x(Din) | state(H)].
        # Re-order to [all (k, x-channel) k-major | all (k, state-channel) k-major]
        # to match the kernel's xg/xc lane layout.
        w4 = w.reshape(K2, Cin, out_dim)
        wx = w4[:, :Din, :].reshape(K2 * Din, out_dim)
        ws = w4[:, Din:, :].reshape(K2 * H, out_dim)
        return jnp.concatenate([wx, ws], axis=0).astype(matmul_dtype)

    return dict(
        s_all=s_all,
        wg=reorder_kmajor(params["gate_w"], 2 * H),               # (K2*Cin, 2H)
        wu=reorder_kmajor(params["update_w"], H),                 # (K2*Cin, H)
        bg=params["gate_b"].astype(jnp.float32).reshape(1, 2 * H),
        bu=params["update_b"].astype(jnp.float32).reshape(1, H),
    )


def agcrn_cell(x, state, prepared, *, block_batch=None, vmem_limit_bytes=None):
    B, N, Din = x.shape
    H = state.shape[-1]
    s_all = prepared["s_all"]
    K2N = s_all.shape[0]

    if block_batch is None:
        # Cap the folded batch at 8 (bounded in-kernel unroll / vreg pressure).
        # On v7x prefer block_batch <= B // 2 so grid >= 2 and both TensorCores
        # get work; on v5e/v6e keep it as large as allowed to amortize the
        # ~0.35us per-grid-step overhead.
        block_batch = next(bt for bt in (8, 4, 2, 1) if B % bt == 0)
    Bt = block_batch
    assert B % Bt == 0, "batch must be divisible by the batch block"

    # For large graphs (N ~ 1024+) pass vmem_limit_bytes explicitly: the
    # row-stacked supports (2K*N*N*2 bytes, bf16) are grid-invariant but still
    # counted against the scoped VMEM limit (16 MiB default on v5e, 32 MiB on
    # v6e/v7x; v7x has only 64 MiB physical).
    compiler_params = pltpu.CompilerParams(
        dimension_semantics=("parallel",),
        vmem_limit_bytes=vmem_limit_bytes)

    h2d = pl.pallas_call(
        _agcrn_cell_kernel,
        out_shape=jax.ShapeDtypeStruct((B * N, H), x.dtype),
        grid_spec=pltpu.PrefetchScalarGridSpec(
            num_scalar_prefetch=0,
            grid=(B // Bt,),
            in_specs=[
                pl.BlockSpec((Bt, N, Din), lambda i: (i, 0, 0)),
                pl.BlockSpec((Bt, N, H), lambda i: (i, 0, 0)),
                pl.BlockSpec((K2N, N), lambda i: (0, 0)),
                pl.BlockSpec(prepared["wg"].shape, lambda i: (0, 0)),
                pl.BlockSpec(prepared["wu"].shape, lambda i: (0, 0)),
                pl.BlockSpec((1, 2 * H), lambda i: (0, 0)),
                pl.BlockSpec((1, H), lambda i: (0, 0)),
            ],
            out_specs=pl.BlockSpec((Bt * N, H), lambda i: (i, 0)),
        ),
        compiler_params=compiler_params,
    )(x, state, s_all, prepared["wg"], prepared["wu"],
      prepared["bg"], prepared["bu"])
    return h2d.reshape(B, N, H)


# ------------------------- pure-JAX reference ----------------------------------
def _agcn_ref(x, sup_stack, w, b, matmul_dtype):
    xg = jnp.concatenate(
        [jnp.einsum('nm,bmc->bnc', sup_stack[k].astype(matmul_dtype),
                    x.astype(matmul_dtype),
                    preferred_element_type=jnp.float32)
         for k in range(sup_stack.shape[0])], axis=-1)
    return jnp.einsum('bni,io->bno', xg.astype(matmul_dtype),
                      w.astype(matmul_dtype),
                      preferred_element_type=jnp.float32) + b


def agcrn_cell_ref(x, state, supports, params, cheb_k, matmul_dtype=jnp.float32):
    sup = build_cheb_supports(supports, cheb_k)
    H = state.shape[-1]
    xs = jnp.concatenate([x, state], axis=-1)
    zr = jax.nn.sigmoid(_agcn_ref(xs, sup, params["gate_w"], params["gate_b"],
                                  matmul_dtype))
    z, r = zr[..., :H], zr[..., H:]
    cand = jnp.concatenate([x, z * state], axis=-1)
    hc = jnp.tanh(_agcn_ref(cand, sup, params["update_w"], params["update_b"],
                            matmul_dtype))
    return r * state + (1.0 - r) * hc


# --------------------------------- demo -----------------------------------------
if __name__ == "__main__":
    B, N, Din, H, cheb_k = 4, 16, 4, 32, 3   # node_num=16, dim_in=4, dim_out=32
    Cin = Din + H

    key = jax.random.PRNGKey(0)
    k1, k2, k3, k4, k5 = jax.random.split(key, 5)

    x = jax.random.normal(k1, (B, N, Din), jnp.float32)
    state = jax.random.normal(k2, (B, N, H), jnp.float32)
    a1 = jax.nn.softmax(jax.random.normal(k3, (N, N), jnp.float32), axis=-1)
    a2 = jax.nn.softmax(jax.random.normal(k4, (N, N), jnp.float32), axis=-1)
    supports = [a1, a2]

    def xavier_normal(k, shape):
        fan_in, fan_out = shape
        std = (2.0 / (fan_in + fan_out)) ** 0.5
        return std * jax.random.normal(k, shape, jnp.float32)

    kg, ku = jax.random.split(k5)
    params = {
        "gate_w": xavier_normal(kg, (2 * cheb_k * Cin, 2 * H)),
        "gate_b": jnp.zeros((2 * H,), jnp.float32),
        "update_w": xavier_normal(ku, (2 * cheb_k * Cin, H)),
        "update_b": jnp.zeros((H,), jnp.float32),
    }

    prepared = prepare_agcrn_params(supports, params, cheb_k, Din, H,
                                    matmul_dtype=jnp.bfloat16)
    # block_batch=2 -> grid=(2,): exercises batch folding AND a multi-step
    # "parallel" grid (sharded across both TensorCores on v7x).
    h = agcrn_cell(x, state, prepared, block_batch=2)
    h = jax.block_until_ready(h)

    # Reference with matching bf16 matmul operands (tight check).
    h_ref_bf16 = agcrn_cell_ref(x, state, supports, params, cheb_k, jnp.bfloat16)
    np.testing.assert_allclose(np.asarray(h), np.asarray(h_ref_bf16),
                               rtol=1e-2, atol=1e-2)
    # Full-f32 module semantics (loose sanity check for the bf16 MXU path).
    h_ref_f32 = agcrn_cell_ref(x, state, supports, params, cheb_k, jnp.float32)
    np.testing.assert_allclose(np.asarray(h), np.asarray(h_ref_f32),
                               rtol=1e-1, atol=1e-1)
    print("KERNEL_OK")
</pallas_src>

<mosaic_0001>
module attributes {stable_mosaic.version = 11 : i64} {
  func.func @_agcrn_cell_kernel(%arg0: i32, %arg1: memref<2x16x4xf32, #tpu.memory_space<vmem>>, %arg2: memref<2x16x32xf32, #tpu.memory_space<vmem>>, %arg3: memref<96x16xbf16, #tpu.memory_space<vmem>>, %arg4: memref<216x64xbf16, #tpu.memory_space<vmem>>, %arg5: memref<216x32xbf16, #tpu.memory_space<vmem>>, %arg6: memref<1x64xf32, #tpu.memory_space<vmem>>, %arg7: memref<1x32xf32, #tpu.memory_space<vmem>>, %arg8: memref<32x32xf32, #tpu.memory_space<vmem>>) attributes {dimension_semantics = [#tpu.dimension_semantics<parallel>], iteration_bounds = array<i64: 2>, scalar_prefetch = 0 : i64, scratch_operands = 0 : i64, tpu.core_type = #tpu.core_type<tc>, window_params = [{transform_indices = @transform_0, window_bounds = array<i64: 2, 16, 4>}, {transform_indices = @transform_1, window_bounds = array<i64: 2, 16, 32>}, {pipeline_mode = #tpu.pipeline_mode<synchronous>, transform_indices = @transform_2, window_bounds = array<i64: 96, 16>}, {pipeline_mode = #tpu.pipeline_mode<synchronous>, transform_indices = @transform_3, window_bounds = array<i64: 216, 64>}, {pipeline_mode = #tpu.pipeline_mode<synchronous>, transform_indices = @transform_4, window_bounds = array<i64: 216, 32>}, {pipeline_mode = #tpu.pipeline_mode<synchronous>, transform_indices = @transform_5, window_bounds = array<i64: 1, 64>}, {pipeline_mode = #tpu.pipeline_mode<synchronous>, transform_indices = @transform_6, window_bounds = array<i64: 1, 32>}, {transform_indices = @transform_7, window_bounds = array<i64: 32, 32>}]} {
    %c0 = arith.constant 0 : index
    %c0_0 = arith.constant 0 : index
    %0 = vector.load %arg3[%c0, %c0_0] : memref<96x16xbf16, #tpu.memory_space<vmem>>, vector<96x16xbf16>
    %c0_1 = arith.constant 0 : index
    %c0_2 = arith.constant 0 : index
    %c0_3 = arith.constant 0 : index
    %1 = vector.load %arg1[%c0_1, %c0_2, %c0_3] : memref<2x16x4xf32, #tpu.memory_space<vmem>>, vector<1x16x4xf32>
    %2 = vector.shape_cast %1 : vector<1x16x4xf32> to vector<16x4xf32>
    %c1 = arith.constant 1 : index
    %c0_4 = arith.constant 0 : index
    %c0_5 = arith.constant 0 : index
    %3 = vector.load %arg1[%c1, %c0_4, %c0_5] : memref<2x16x4xf32, #tpu.memory_space<vmem>>, vector<1x16x4xf32>
    %4 = vector.shape_cast %3 : vector<1x16x4xf32> to vector<16x4xf32>
    %c0_6 = arith.constant 0 : index
    %c0_7 = arith.constant 0 : index
    %c0_8 = arith.constant 0 : index
    %5 = vector.load %arg2[%c0_6, %c0_7, %c0_8] : memref<2x16x32xf32, #tpu.memory_space<vmem>>, vector<1x16x32xf32>
    %6 = vector.shape_cast %5 : vector<1x16x32xf32> to vector<16x32xf32>
    %c1_9 = arith.constant 1 : index
    %c0_10 = arith.constant 0 : index
    %c0_11 = arith.constant 0 : index
    %7 = vector.load %arg2[%c1_9, %c0_10, %c0_11] : memref<2x16x32xf32, #tpu.memory_space<vmem>>, vector<1x16x32xf32>
    %8 = vector.shape_cast %7 : vector<1x16x32xf32> to vector<16x32xf32>
    %9 = tpu.concatenate %2, %4 in 1 : vector<16x4xf32>, vector<16x4xf32> -> vector<16x8xf32>
    %10 = tpu.concatenate %6, %8 in 1 : vector<16x32xf32>, vector<16x32xf32> -> vector<16x64xf32>
    %11 = tpu.concatenate %6, %8 in 0 : vector<16x32xf32>, vector<16x32xf32> -> vector<32x32xf32>
    %12 = tpu.concatenate %9, %10 in 1 : vector<16x8xf32>, vector<16x64xf32> -> vector<16x72xf32>
    %13 = arith.truncf %12 : vector<16x72xf32> to vector<16x72xbf16>
    %cst = arith.constant dense<0.000000e+00> : vector<96x72xf32>
    %14 = tpu.matmul %0, %13, %cst {dimension_numbers = #tpu.dot_dimension_numbers<[1], [0], [0], [1], [0, 0, 1, 1], [], []>} : vector<96x16xbf16>, vector<16x72xbf16>, vector<96x72xf32> -> vector<96x72xf32>
    %15 = vector.extract_strided_slice %14 {offsets = [0, 0], sizes = [96, 8], strides = [1, 1]} : vector<96x72xf32> to vector<96x8xf32>
    %16 = vector.extract_strided_slice %14 {offsets = [0, 8], sizes = [96, 64], strides = [1, 1]} : vector<96x72xf32> to vector<96x64xf32>
    %17 = vector.extract_strided_slice %15 {offsets = [0, 0], sizes = [16, 4], strides = [1, 1]} : vector<96x8xf32> to vector<16x4xf32>
    %18 = vector.extract_strided_slice %15 {offsets = [16, 0], sizes = [16, 4], strides = [1, 1]} : vector<96x8xf32> to vector<16x4xf32>
    %19 = vector.extract_strided_slice %15 {offsets = [32, 0], sizes = [16, 4], strides = [1, 1]} : vector<96x8xf32> to vector<16x4xf32>
    %20 = vector.extract_strided_slice %15 {offsets = [48, 0], sizes = [16, 4], strides = [1, 1]} : vector<96x8xf32> to vector<16x4xf32>
    %21 = vector.extract_strided_slice %15 {offsets = [64, 0], sizes = [16, 4], strides = [1, 1]} : vector<96x8xf32> to vector<16x4xf32>
    %22 = vector.extract_strided_slice %15 {offsets = [80, 0], sizes = [16, 4], strides = [1, 1]} : vector<96x8xf32> to vector<16x4xf32>
    %23 = tpu.concatenate %17, %18, %19, %20, %21, %22 in 1 : vector<16x4xf32>, vector<16x4xf32>, vector<16x4xf32>, vector<16x4xf32>, vector<16x4xf32>, vector<16x4xf32> -> vector<16x24xf32>
    %24 = vector.extract_strided_slice %15 {offsets = [0, 4], sizes = [16, 4], strides = [1, 1]} : vector<96x8xf32> to vector<16x4xf32>
    %25 = vector.extract_strided_slice %15 {offsets = [16, 4], sizes = [16, 4], strides = [1, 1]} : vector<96x8xf32> to vector<16x4xf32>
    %26 = vector.extract_strided_slice %15 {offsets = [32, 4], sizes = [16, 4], strides = [1, 1]} : vector<96x8xf32> to vector<16x4xf32>
    %27 = vector.extract_strided_slice %15 {offsets = [48, 4], sizes = [16, 4], strides = [1, 1]} : vector<96x8xf32> to vector<16x4xf32>
    %28 = vector.extract_strided_slice %15 {offsets = [64, 4], sizes = [16, 4], strides = [1, 1]} : vector<96x8xf32> to vector<16x4xf32>
    %29 = vector.extract_strided_slice %15 {offsets = [80, 4], sizes = [16, 4], strides = [1, 1]} : vector<96x8xf32> to vector<16x4xf32>
    %30 = tpu.concatenate %24, %25, %26, %27, %28, %29 in 1 : vector<16x4xf32>, vector<16x4xf32>, vector<16x4xf32>, vector<16x4xf32>, vector<16x4xf32>, vector<16x4xf32> -> vector<16x24xf32>
    %31 = tpu.concatenate %23, %30 in 0 : vector<16x24xf32>, vector<16x24xf32> -> vector<32x24xf32>
    %32 = vector.extract_strided_slice %16 {offsets = [0, 0], sizes = [16, 32], strides = [1, 1]} : vector<96x64xf32> to vector<16x32xf32>
    %33 = vector.extract_strided_slice %16 {offsets = [16, 0], sizes = [16, 32], strides = [1, 1]} : vector<96x64xf32> to vector<16x32xf32>
    %34 = vector.extract_strided_slice %16 {offsets = [32, 0], sizes = [16, 32], strides = [1, 1]} : vector<96x64xf32> to vector<16x32xf32>
    %35 = vector.extract_strided_slice %16 {offsets = [48, 0], sizes = [16, 32], strides = [1, 1]} : vector<96x64xf32> to vector<16x32xf32>
    %36 = vector.extract_strided_slice %16 {offsets = [64, 0], sizes = [16, 32], strides = [1, 1]} : vector<96x64xf32> to vector<16x32xf32>
    %37 = vector.extract_strided_slice %16 {offsets = [80, 0], sizes = [16, 32], strides = [1, 1]} : vector<96x64xf32> to vector<16x32xf32>
    %38 = tpu.concatenate %32, %33, %34, %35, %36, %37 in 1 : vector<16x32xf32>, vector<16x32xf32>, vector<16x32xf32>, vector<16x32xf32>, vector<16x32xf32>, vector<16x32xf32> -> vector<16x192xf32>
    %39 = vector.extract_strided_slice %16 {offsets = [0, 32], sizes = [16, 32], strides = [1, 1]} : vector<96x64xf32> to vector<16x32xf32>
    %40 = vector.extract_strided_slice %16 {offsets = [16, 32], sizes = [16, 32], strides = [1, 1]} : vector<96x64xf32> to vector<16x32xf32>
    %41 = vector.extract_strided_slice %16 {offsets = [32, 32], sizes = [16, 32], strides = [1, 1]} : vector<96x64xf32> to vector<16x32xf32>
    %42 = vector.extract_strided_slice %16 {offsets = [48, 32], sizes = [16, 32], strides = [1, 1]} : vector<96x64xf32> to vector<16x32xf32>
    %43 = vector.extract_strided_slice %16 {offsets = [64, 32], sizes = [16, 32], strides = [1, 1]} : vector<96x64xf32> to vector<16x32xf32>
    %44 = vector.extract_strided_slice %16 {offsets = [80, 32], sizes = [16, 32], strides = [1, 1]} : vector<96x64xf32> to vector<16x32xf32>
    %45 = tpu.concatenate %39, %40, %41, %42, %43, %44 in 1 : vector<16x32xf32>, vector<16x32xf32>, vector<16x32xf32>, vector<16x32xf32>, vector<16x32xf32>, vector<16x32xf32> -> vector<16x192xf32>
    %46 = tpu.concatenate %38, %45 in 0 : vector<16x192xf32>, vector<16x192xf32> -> vector<32x192xf32>
    %47 = tpu.concatenate %31, %46 in 1 : vector<32x24xf32>, vector<32x192xf32> -> vector<32x216xf32>
    %48 = arith.truncf %47 : vector<32x216xf32> to vector<32x216xbf16>
    %c0_12 = arith.constant 0 : index
    %c0_13 = arith.constant 0 : index
    %49 = vector.load %arg4[%c0_12, %c0_13] : memref<216x64xbf16, #tpu.memory_space<vmem>>, vector<216x64xbf16>
    %cst_14 = arith.constant dense<0.000000e+00> : vector<32x64xf32>
    %50 = tpu.matmul %48, %49, %cst_14 {dimension_numbers = #tpu.dot_dimension_numbers<[1], [0], [0], [1], [0, 0, 1, 1], [], []>} : vector<32x216xbf16>, vector<216x64xbf16>, vector<32x64xf32> -> vector<32x64xf32>
    %c0_15 = arith.constant 0 : index
    %c0_16 = arith.constant 0 : index
    %51 = vector.load %arg6[%c0_15, %c0_16] : memref<1x64xf32, #tpu.memory_space<vmem>>, vector<1x64xf32>
    %52 = vector.broadcast %51 : vector<1x64xf32> to vector<32x64xf32>
    %53 = arith.addf %50, %52 : vector<32x64xf32>
    %54 = arith.negf %53 : vector<32x64xf32>
    %55 = math.exp %54 : vector<32x64xf32>
    %cst_17 = arith.constant 1.000000e+00 : f32
    %56 = vector.broadcast %cst_17 : f32 to vector<32x64xf32>
    %57 = arith.addf %56, %55 : vector<32x64xf32>
    %58 = arith.divf %56, %57 : vector<32x64xf32>
    %59 = vector.extract_strided_slice %58 {offsets = [0, 0], sizes = [32, 32], strides = [1, 1]} : vector<32x64xf32> to vector<32x32xf32>
    %60 = vector.extract_strided_slice %58 {offsets = [0, 32], sizes = [32, 32], strides = [1, 1]} : vector<32x64xf32> to vector<32x32xf32>
    %61 = arith.mulf %59, %11 : vector<32x32xf32>
    %62 = vector.extract_strided_slice %61 {offsets = [0, 0], sizes = [16, 32], strides = [1, 1]} : vector<32x32xf32> to vector<16x32xf32>
    %63 = vector.extract_strided_slice %61 {offsets = [16, 0], sizes = [16, 32], strides = [1, 1]} : vector<32x32xf32> to vector<16x32xf32>
    %64 = tpu.concatenate %62, %63 in 1 : vector<16x32xf32>, vector<16x32xf32> -> vector<16x64xf32>
    %65 = arith.truncf %64 : vector<16x64xf32> to vector<16x64xbf16>
    %cst_18 = arith.constant dense<0.000000e+00> : vector<96x64xf32>
    %66 = tpu.matmul %0, %65, %cst_18 {dimension_numbers = #tpu.dot_dimension_numbers<[1], [0], [0], [1], [0, 0, 1, 1], [], []>} : vector<96x16xbf16>, vector<16x64xbf16>, vector<96x64xf32> -> vector<96x64xf32>
    %67 = vector.extract_strided_slice %66 {offsets = [0, 0], sizes = [16, 32], strides = [1, 1]} : vector<96x64xf32> to vector<16x32xf32>
    %68 = vector.extract_strided_slice %66 {offsets = [16, 0], sizes = [16, 32], strides = [1, 1]} : vector<96x64xf32> to vector<16x32xf32>
    %69 = vector.extract_strided_slice %66 {offsets = [32, 0], sizes = [16, 32], strides = [1, 1]} : vector<96x64xf32> to vector<16x32xf32>
    %70 = vector.extract_strided_slice %66 {offsets = [48, 0], sizes = [16, 32], strides = [1, 1]} : vector<96x64xf32> to vector<16x32xf32>
    %71 = vector.extract_strided_slice %66 {offsets = [64, 0], sizes = [16, 32], strides = [1, 1]} : vector<96x64xf32> to vector<16x32xf32>
    %72 = vector.extract_strided_slice %66 {offsets = [80, 0], sizes = [16, 32], strides = [1, 1]} : vector<96x64xf32> to vector<16x32xf32>
    %73 = tpu.concatenate %67, %68, %69, %70, %71, %72 in 1 : vector<16x32xf32>, vector<16x32xf32>, vector<16x32xf32>, vector<16x32xf32>, vector<16x32xf32>, vector<16x32xf32> -> vector<16x192xf32>
    %74 = vector.extract_strided_slice %66 {offsets = [0, 32], sizes = [16, 32], strides = [1, 1]} : vector<96x64xf32> to vector<16x32xf32>
    %75 = vector.extract_strided_slice %66 {offsets = [16, 32], sizes = [16, 32], strides = [1, 1]} : vector<96x64xf32> to vector<16x32xf32>
    %76 = vector.extract_strided_slice %66 {offsets = [32, 32], sizes = [16, 32], strides = [1, 1]} : vector<96x64xf32> to vector<16x32xf32>
    %77 = vector.extract_strided_slice %66 {offsets = [48, 32], sizes = [16, 32], strides = [1, 1]} : vector<96x64xf32> to vector<16x32xf32>
    %78 = vector.extract_strided_slice %66 {offsets = [64, 32], sizes = [16, 32], strides = [1, 1]} : vector<96x64xf32> to vector<16x32xf32>
    %79 = vector.extract_strided_slice %66 {offsets = [80, 32], sizes = [16, 32], strides = [1, 1]} : vector<96x64xf32> to vector<16x32xf32>
    %80 = tpu.concatenate %74, %75, %76, %77, %78, %79 in 1 : vector<16x32xf32>, vector<16x32xf32>, vector<16x32xf32>, vector<16x32xf32>, vector<16x32xf32>, vector<16x32xf32> -> vector<16x192xf32>
    %81 = tpu.concatenate %73, %80 in 0 : vector<16x192xf32>, vector<16x192xf32> -> vector<32x192xf32>
    %82 = tpu.concatenate %31, %81 in 1 : vector<32x24xf32>, vector<32x192xf32> -> vector<32x216xf32>
    %83 = arith.truncf %82 : vector<32x216xf32> to vector<32x216xbf16>
    %c0_19 = arith.constant 0 : index
    %c0_20 = arith.constant 0 : index
    %84 = vector.load %arg5[%c0_19, %c0_20] : memref<216x32xbf16, #tpu.memory_space<vmem>>, vector<216x32xbf16>
    %cst_21 = arith.constant dense<0.000000e+00> : vector<32x32xf32>
    %85 = tpu.matmul %83, %84, %cst_21 {dimension_numbers = #tpu.dot_dimension_numbers<[1], [0], [0], [1], [0, 0, 1, 1], [], []>} : vector<32x216xbf16>, vector<216x32xbf16>, vector<32x32xf32> -> vector<32x32xf32>
    %c0_22 = arith.constant 0 : index
    %c0_23 = arith.constant 0 : index
    %86 = vector.load %arg7[%c0_22, %c0_23] : memref<1x32xf32, #tpu.memory_space<vmem>>, vector<1x32xf32>
    %87 = vector.broadcast %86 : vector<1x32xf32> to vector<32x32xf32>
    %88 = arith.addf %85, %87 : vector<32x32xf32>
    %89 = math.tanh %88 : vector<32x32xf32>
    %90 = arith.mulf %60, %11 : vector<32x32xf32>
    %cst_24 = arith.constant 1.000000e+00 : f32
    %91 = vector.broadcast %cst_24 : f32 to vector<32x32xf32>
    %92 = arith.subf %91, %60 : vector<32x32xf32>
    %93 = arith.mulf %92, %89 : vector<32x32xf32>
    %94 = arith.addf %90, %93 : vector<32x32xf32>
    %c0_25 = arith.constant 0 : index
    %c0_26 = arith.constant 0 : index
    %95 = vector.load %arg8[%c0_25, %c0_26] : memref<32x32xf32, #tpu.memory_space<vmem>>, vector<32x32xf32>
    tpu.vector_store %arg8[%c0_25, %c0_26], %94 {strides = array<i32>} : memref<32x32xf32, #tpu.memory_space<vmem>>, vector<32x32xf32>,
    return
  }
  func.func @transform_0(%arg0: i32) -> (i32, i32, i32) {
    %c0_i32 = arith.constant 0 : i32
    %c0_i32_0 = arith.constant 0 : i32
    %c0_i32_1 = arith.constant 0 : i32
    return %arg0, %c0_i32, %c0_i32_0 : i32, i32, i32
  }
  func.func @transform_1(%arg0: i32) -> (i32, i32, i32) {
    %c0_i32 = arith.constant 0 : i32
    %c0_i32_0 = arith.constant 0 : i32
    %c0_i32_1 = arith.constant 0 : i32
    return %arg0, %c0_i32, %c0_i32_0 : i32, i32, i32
  }
  func.func @transform_2(%arg0: i32) -> (i32, i32) {
    %c0_i32 = arith.constant 0 : i32
    %c0_i32_0 = arith.constant 0 : i32
    %c0_i32_1 = arith.constant 0 : i32
    return %c0_i32, %c0_i32_0 : i32, i32
  }
  func.func @transform_3(%arg0: i32) -> (i32, i32) {
    %c0_i32 = arith.constant 0 : i32
    %c0_i32_0 = arith.constant 0 : i32
    %c0_i32_1 = arith.constant 0 : i32
    return %c0_i32, %c0_i32_0 : i32, i32
  }
  func.func @transform_4(%arg0: i32) -> (i32, i32) {
    %c0_i32 = arith.constant 0 : i32
    %c0_i32_0 = arith.constant 0 : i32
    %c0_i32_1 = arith.constant 0 : i32
    return %c0_i32, %c0_i32_0 : i32, i32
  }
  func.func @transform_5(%arg0: i32) -> (i32, i32) {
    %c0_i32 = arith.constant 0 : i32
    %c0_i32_0 = arith.constant 0 : i32
    %c0_i32_1 = arith.constant 0 : i32
    return %c0_i32, %c0_i32_0 : i32, i32
  }
  func.func @transform_6(%arg0: i32) -> (i32, i32) {
    %c0_i32 = arith.constant 0 : i32
    %c0_i32_0 = arith.constant 0 : i32
    %c0_i32_1 = arith.constant 0 : i32
    return %c0_i32, %c0_i32_0 : i32, i32
  }
  func.func @transform_7(%arg0: i32) -> (i32, i32) {
    %c0_i32 = arith.constant 0 : i32
    %c0_i32_0 = arith.constant 0 : i32
    return %arg0, %c0_i32 : i32, i32
  }
}

</mosaic_0001>

<bundles_post_ra>
// kernel: tpu_custom_call.1
= control target key start
LH: loop header
LB: loop body
LE: loop exit
PB: predicated region body
PF: predicated region fallthrough
CT: control target
= control target key end

     0   :  { %s1912_s24 = smov 0   ;;  %s2352_s0 = inlined_call_operand.vmem [shape: f32[4,16,4], index: 0, kind: input, shape index: {}]   ;;  %s2353_s1 = inlined_call_operand.vmem [shape: f32[4,16,32], index: 1, kind: input, shape index: {}]   ;;  %s2354_s2 = inlined_call_operand.vmem [shape: bf16[96,16], index: 2, kind: input, shape index: {}]   ;;  %s2355_s3 = inlined_call_operand.vmem [shape: bf16[216,64], index: 3, kind: input, shape index: {}]   ;;  %s2356_s4 = inlined_call_operand.vmem [shape: bf16[216,32], index: 4, kind: input, shape index: {}]   ;;  %s2357_s5 = inlined_call_operand.vmem [shape: f32[1,64], index: 5, kind: input, shape index: {}]   ;;  %s2358_s6 = inlined_call_operand.vmem [shape: f32[1,32], index: 6, kind: input, shape index: {}]   ;;  %s2359_s7 = inlined_call_operand.vmem [shape: f32[64,32], index: 7, kind: output, shape index: {}]  }
   0x1 LB: > { %s1446_s25 = sadd.s32 4294967295, %s1856_s24   ;;  %p1450_p0 = scmp.ge.s32.totalorder %s1856_s24, 1  ;;  %s1856_s24 = sphi %s1912_s24, %s17_s24  }
   0x2   : > { %p251_p1 = scmp.lt.s32.totalorder %s1856_s24, 3 }
   0x4   : > { %p252_p2 = pnand %p1450_p0, %p251_p1 }
   0x5   : > { %s1451_s26 = sshll.u32 (!%p252_p2), %s1446_s25, 1  ;;  %s1858_s11 = smov (!%p252_p2), 32  }
   0x6   : > { %255 = sbr.rel (%p252_p2) target bundleno = 1998 (0x7ce), region = 48  ;;  %p291_p3 = scmp.lt.s32.totalorder (!%p252_p2), %s1451_s26, 3 }
   0x7   : > { %s1859_s12 = smov (!%p252_p2), 4   ;;  %s1860_s15 = smov (!%p252_p2), 8  }
   0x8   : > { %s1861_s28 = smov (!%p252_p2), 24   ;;  %s1862_s29 = smov (!%p252_p2), 120  }
   0x9   : > { %s1864_s8 = smov (!%p252_p2), 56   ;;  %s1865_s13 = smov (!%p252_p2), 124  }
   0xa   : > { %s1867_s17 = smov (!%p252_p2), 12   ;;  %s1868_s20 = smov (!%p252_p2), 20  }
   0xb   : > { %s2361_s26 = smov (!%p291_p3, %s1451_s26), 3  ;;  %v1792_v6 = vld [vmem:[%s2354_s2] sm:$0xff]   ;;  %vm397_vm0 = vcmask 130048   ;;  %vm352_vm1 = vcmask 261120   ;;  %vm341_vm2 = vcmask 31744   ;;  %vm363_vm3 = vcmask 64512  }
   0xc   : > { %s1521_s27 = sshll.u32 %s2361_s26, 4  ;;  %1539 = vmatprep.mubr.msk.bf16.mxu1 %vm397_vm0, %v1792_v6  ;;  %1553 = vmatprep.mubr.msk.bf16.mxu0 %vm397_vm0, %v1792_v6  ;;  %v1964_v26 = vld [vmem:[%s2354_s2 + $0x8] sm:$0xff]   ;;  %v1969_v27 = vld [vmem:[%s2354_s2 + $0x10] sm:$0xff]   ;;  %v1978_v28 = vld [vmem:[%s2354_s2 + $0x18] sm:$0xff]   ;;  %v1866_v50 = vmov 0   ;;  %s1869_s21 = smov 16  }
   0xd   : > { %s302_s30 = scalar_lea.vmem %s2353_s1, %s1521_s27  ;;  %s295_s10 = scalar_lea.vmem %s2352_s0, %s1521_s27  ;;  %v1983_v29 = vld [vmem:[%s2354_s2 + $0x20] sm:$0xff]   ;;  %v1992_v30 = vld [vmem:[%s2354_s2 + $0x28] sm:$0xff]   ;;  %v1798_v49 = vld [vmem:[%s2355_s3 + $0x38] sm:$0xff]   ;;  %vm848_vm4 = vcmask 1043456   ;;  %vm629_vm5 = vcmask 523264   ;;  %vm632_vm6 = vcmask 785408  }
   0xe   : > { %v1928_v0 = vld [vmem:[%s302_s30 + $0x10] sm:$0xff]  ;;  %v1932_v1 = vld [vmem:[%s302_s30 + $0x18] sm:$0xff]  ;;  %v1942_v7 = vld [vmem:[%s302_s30] sm:$0xff]  ;;  %vm541_vm7 = vcmask 97280   ;;  %vm546_vm8 = vcmask 162816   ;;  %vm705_vm9 = vcmask 195584  }
   0xf   : > { %346 = vrot.lane.b32.xlu0 %v1928_v0, %s1858_s11  ;;  %v1459_v2 = vld [vmem:[%s295_s10 + $0x10] sm:$0xff]  ;;  %v1460_v3 = vld [vmem:[%s295_s10 + $0x18] sm:$0xff]  ;;  %v1944_v8 = vld [vmem:[%s302_s30 + $0x8] sm:$0xff]  ;;  %s1863_s30 = smov 88   ;;  %vm841_vm10 = vcmask 719872  }
  0x10   : > { %v1587_v4 = vpack.i.bf16 %v1460_v3, %v1459_v2  ;;  %v323_v16 = vld [vmem:[%s295_s10] sm:$0xff]  ;;  %v324_v17 = vld [vmem:[%s295_s10 + $0x8] sm:$0xff]  ;;  %v1799_v51 = vld [vmem:[%s2355_s3 + $0x30] sm:$0xff]  }
  0x11   : > { %v1800_v52 = vld [vmem:[%s2355_s3 + $0x28] sm:$0xff]   ;;  %v1801_v53 = vld [vmem:[%s2355_s3 + $0x20] sm:$0xff]   ;;  %v1802_v54 = vld [vmem:[%s2355_s3 + $0x18] sm:$0xff]  }
  0x12   : > { %1588 = vrot.lane.b32.xlu1 %v1587_v4, %s1859_s12  ;;  %v1803_v55 = vld [vmem:[%s2355_s3 + $0x10] sm:$0xff]   ;;  %v1804_v56 = vld [vmem:[%s2355_s3 + $0x8] sm:$0xff]   ;;  %v1805_v57 = vld [vmem:[%s2355_s3] sm:$0xff]  }
  0x13   : > { %348 = vrot.lane.b32.xlu0 %v1932_v1, %s1858_s11  ;;  %v1806_v58 = vld [vmem:[%s2355_s3 + $0x68] ss:$0 sps:$4 sm:$0xff]   ;;  %v1807_v60 = vld [vmem:[%s2355_s3 + $0x60] sm:$0xff]   ;;  %v1808_v61 = vld [vmem:[%s2355_s3 + $0x58] sm:$0xff]  }
  0x14   : > { %v850_v59 = vsel %vm848_vm4, %v1806_v58, 0  ;;  %v1809_v62 = vld [vmem:[%s2355_s3 + $0x50] sm:$0xff]   ;;  %v1810_v63 = vld [vmem:[%s2355_s3 + $0x48] sm:$0xff]  }
  0x81   : > { %v1937_v5 = vpop.permute.xlu0 %346 }
  0x82   : > { %v353_v10 = vsel %vm352_vm1, %v1942_v7, %v1937_v5 }
  0x84   : > { %v1589_v13 = vpop.permute.xlu1 %1588 }
  0x85   : > { %v1948_v9 = vpop.permute.xlu0 %348  ;;  %v1591_v14 = vunpack.i.h.bf16 %v1589_v13  ;;  %v1590_v15 = vunpack.i.l.bf16 %v1589_v13 }
  0x86   : > { %v354_v11 = vsel %vm352_vm1, %v1944_v8, %v1948_v9 }
  0x87   : > { %v1592_v12 = vpack.i.bf16 %v354_v11, %v353_v10  ;;  %v342_v21 = vsel %vm341_vm2, %v323_v16, %v1590_v15  ;;  %v343_v22 = vsel %vm341_vm2, %v324_v17, %v1591_v14 }
  0x89   : > { %1593 = vrot.lane.b32.xlu1 %v1592_v12, %s1860_s15  ;;  %v1811_v12 = vld [vmem:[%s2355_s3 + $0x40] sm:$0xff]  }
  0xfb   : > { %v1594_v18 = vpop.permute.xlu1 %1593 }
  0xfc   : > { %v1596_v19 = vunpack.i.h.bf16 %v1594_v18  ;;  %v1595_v20 = vunpack.i.l.bf16 %v1594_v18 }
  0xfe   : > { %v364_v23 = vsel %vm363_vm3, %v342_v21, %v1595_v20  ;;  %v365_v24 = vsel %vm363_vm3, %v343_v22, %v1596_v19 }
  0xff   : > { %v366_v25 = vpack.c.bf16 %v365_v24, %v364_v23 }
 0x101   : > { %1537 = vmatprep.subr.bf16.mxu1 %v366_v25 }
 0x102   : > { %1538 = vmatpush3.bf16.msra.mxu1 %v366_v25 }
 0x103   : > { %852 = vmatprep.subr.bf16.mxu1 %v1866_v50 }
 0x105   : > { %1540 = vmatmul.mubr.msk.bf16.vlgmr.msra.gmra.mxu1 %vm397_vm0, %v1964_v26 }
 0x106   : > { %1543 = vmatprep.mubr.msk.bf16.mxu1 %vm397_vm0, %v1969_v27  ;;  %853 = vmatpush1.bf16.msra.mxu1 %v1798_v49 }
 0x107   : > { %854 = vmatprep.subr.bf16.mxu1 %v1866_v50 }
 0x10a   : > { %855 = vmatpush1.bf16.msra.mxu1 %v1799_v51 }
 0x10b   : > { %856 = vmatprep.subr.bf16.mxu1 %v1866_v50 }
 0x10d   : > { %1544 = vmatmul.mubr.msk.bf16.gmra.mxu1 %vm397_vm0, %v1978_v28 }
 0x10e   : > { %1547 = vmatprep.mubr.msk.bf16.mxu1 %vm397_vm0, %v1983_v29  ;;  %857 = vmatpush1.bf16.msra.mxu1 %v1800_v52 }
 0x10f   : > { %858 = vmatprep.subr.bf16.mxu1 %v1866_v50 }
 0x112   : > { %859 = vmatpush1.bf16.msra.mxu1 %v1801_v53 }
 0x113   : > { %860 = vmatprep.subr.bf16.mxu1 %v1866_v50 }
 0x115   : > { %1548 = vmatmul.mubr.msk.bf16.gmra.mxu1 %vm397_vm0, %v1992_v30 }
 0x116   : > { %861 = vmatpush1.bf16.msra.mxu1 %v1802_v54 }
 0x117   : > { %862 = vmatprep.subr.bf16.mxu1 %v1866_v50 }
 0x11a   : > { %863 = vmatpush1.bf16.msra.mxu1 %v1803_v55 }
 0x11b   : > { %864 = vmatprep.subr.bf16.mxu1 %v1866_v50 }
 0x11e   : > { %865 = vmatpush1.bf16.msra.mxu1 %v1804_v56 }
 0x11f   : > { %866 = vmatprep.subr.bf16.mxu1 %v1866_v50 }
 0x122   : > { %867 = vmatpush1.bf16.msra.mxu1 %v1805_v57 }
 0x123   : > { %872 = vmatprep.subr.bf16.mxu1 %v1866_v50 }
 0x126   : > { %873 = vmatpush2.bf16.msra.mxu1 %v850_v59 }
 0x127   : > { %874 = vmatprep.subr.bf16.mxu1 %v1866_v50 }
 0x12a   : > { %875 = vmatpush2.bf16.msra.mxu1 %v1807_v60 }
 0x12b   : > { %876 = vmatprep.subr.bf16.mxu1 %v1866_v50 }
 0x12e   : > { %877 = vmatpush2.bf16.msra.mxu1 %v1808_v61 }
 0x12f   : > { %878 = vmatprep.subr.bf16.mxu1 %v1866_v50 }
 0x132   : > { %879 = vmatpush2.bf16.msra.mxu1 %v1809_v62 }
 0x133   : > { %880 = vmatprep.subr.bf16.mxu1 %v1866_v50 }
 0x136   : > { %881 = vmatpush2.bf16.msra.mxu1 %v1810_v63 }
 0x137   : > { %882 = vmatprep.subr.bf16.mxu1 %v1866_v50 }
 0x13a   : > { %883 = vmatpush2.bf16.msra.mxu1 %v1811_v12 }
 0x1c5   : > { %v1996_v31 = vpop.f32.mrf.mxu1 }
 0x1c7   : > { %v1998_v32 = vpop.f32.mrf.mxu1 }
 0x1c9   : > { %v2000_v33 = vpop.f32.mrf.mxu1 }
 0x1ca   : > { %v1597_v34 = vpack.i.bf16 %v2000_v33, %v1996_v31 }
 0x1cb   : > { %v2004_v35 = vpop.f32.mrf.mxu1 }
 0x1cc   : > { %1598 = vrot.lane.b32.xlu1 %v1597_v34, %s1861_s28  ;;  %v1607_v36 = vpack.i.bf16 %v2004_v35, %v1998_v32 }
 0x1cd   : > { %v1545_v37 = vpop.f32.mrf.mxu1 }
 0x1ce   : > { %1608 = vrot.lane.b32.xlu0 %v1607_v36, %s1862_s29 }
 0x1cf   : > { %v466_v38 = vpop.f32.mrf.mxu1 }
 0x1d0   : > { %1603 = vrot.lane.b32.xlu1 %v1597_v34, %s1862_s29 }
 0x1d1   : > { %v1546_v39 = vpop.f32.mrf.mxu1 }
 0x1d2   : > { %1613 = vrot.lane.b32.xlu0 %v1607_v36, %s1863_s30  ;;  %v1617_v40 = vpack.i.bf16 %v1546_v39, %v1545_v37 }
 0x1d3   : > { %v469_v41 = vpop.f32.mrf.mxu1 }
 0x1d4   : > { %1618 = vrot.lane.b32.xlu1 %v1617_v40, %s1863_s30  ;;  %v1622_v42 = vpack.i.bf16 %v469_v41, %v466_v38 }
 0x1d5   : > { %v1549_v43 = vpop.f32.mrf.mxu1 }
 0x1d6   : > { %1623 = vrot.lane.b32.xlu0 %v1622_v42, %s1864_s8 }
 0x1d7   : > { %v482_v44 = vpop.f32.mrf.mxu1 }
 0x1d9   : > { %v1550_v45 = vpop.f32.mrf.mxu1 }
 0x1da   : > { %v2009_v46 = vpack.i.bf16 %v1550_v45, %v1549_v43 }
 0x1db   : > { %v485_v47 = vpop.f32.mrf.mxu1 }
 0x1dc   : > { %1628 = vrot.lane.b32.xlu1 %v2009_v46, %s1861_s28  ;;  %v2013_v48 = vpack.i.bf16 %v485_v47, %v482_v44 }
 0x1de   : > { %1633 = vrot.lane.b32.xlu0 %v2013_v48, %s1862_s29 }
 0x1e0   : > { %1643 = vrot.lane.b32.xlu1 %v1617_v40, %s1864_s8 }
 0x1e2   : > { %1638 = vrot.lane.b32.xlu0 %v1622_v42, %s1861_s28 }
 0x1e4   : > { %1653 = vrot.lane.b32.xlu1 %v2009_v46, %s1862_s29  ;;  %s1870_s29 = smov 96  }
 0x1e6   : > { %1648 = vrot.lane.b32.xlu0 %v2013_v48, %s1863_s30  ;;  %s1871_s30 = smov 64  }
 0x1e8   : > { %1663 = vrot.lane.b32.xlu1 %v1622_v42, %s1860_s15 }
 0x1ea   : > { %1658 = vrot.lane.b32.xlu0 %v1597_v34, %s1859_s12 }
 0x1ec   : > { %1678 = vrot.lane.b32.xlu1 %v1607_v36, %s1865_s13 }
 0x1ee   : > { %1668 = vrot.lane.b32.xlu0 %v1617_v40, %s1867_s17 }
 0x1f0   : > { %1688 = vrot.lane.b32.xlu1 %v1617_v40, %s1860_s15 }
 0x1f2   : > { %1673 = vrot.lane.b32.xlu0 %v2009_v46, %s1868_s20 }
 0x1f4   : > { %1693 = vrot.lane.b32.xlu1 %v2013_v48, %s1869_s21 }
 0x1f6   : > { %1683 = vrot.lane.b32.xlu0 %v1622_v42, %s1859_s12 }
 0x23e   : > { %v1599_v2 = vpop.permute.xlu1 %1598 }
 0x23f   : > { %v1601_v17 = vunpack.i.h.bf16 %v1599_v2  ;;  %v1600_v18 = vunpack.i.l.bf16 %v1599_v2 }
 0x240   : > { %v1609_v3 = vpop.permute.xlu0 %1608 }
 0x241   : > { %v1611_v13 = vunpack.i.h.bf16 %v1609_v3  ;;  %v1610_v14 = vunpack.i.l.bf16 %v1609_v3 }
 0x242   : > { %v1604_v4 = vpop.permute.xlu1 %1603 }
 0x243   : > { %v628_v20 = vsel %vm352_vm1, %v1611_v13, %v1601_v17  ;;  %v627_v21 = vsel %vm352_vm1, %v1610_v14, %v1600_v18  ;;  %v1606_v53 = vunpack.i.h.bf16 %v1604_v4  ;;  %v1605_v54 = vunpack.i.l.bf16 %v1604_v4 }
 0x244   : > { %v1614_v6 = vpop.permute.xlu0 %1613 }
 0x245   : > { %v1616_v40 = vunpack.i.h.bf16 %v1614_v6  ;;  %v1615_v41 = vunpack.i.l.bf16 %v1614_v6 }
 0x246   : > { %v1619_v11 = vpop.permute.xlu1 %1618 }
 0x247   : > { %v1621_v22 = vunpack.i.h.bf16 %v1619_v11  ;;  %v1620_v23 = vunpack.i.l.bf16 %v1619_v11  ;;  %v674_v58 = vsel %vm352_vm1, %v1616_v40, %v1606_v53  ;;  %v673_v59 = vsel %vm352_vm1, %v1615_v41, %v1605_v54 }
 0x248   : > { %v1624_v10 = vpop.permute.xlu0 %1623 }
 0x249   : > { %v1626_v15 = vunpack.i.h.bf16 %v1624_v10  ;;  %v1625_v16 = vunpack.i.l.bf16 %v1624_v10 }
 0x24b   : > { %v631_v24 = vsel %vm629_vm5, %v628_v20, %v1626_v15  ;;  %v630_v25 = vsel %vm629_vm5, %v627_v21, %v1625_v16 }
 0x24c   : > { %v634_v43 = vsel %vm632_vm6, %v631_v24, %v1621_v22  ;;  %v633_v45 = vsel %vm632_vm6, %v630_v25, %v1620_v23 }
 0x24e   : > { %v1629_v19 = vpop.permute.xlu1 %1628 }
 0x24f   : > { %v1631_v36 = vunpack.i.h.bf16 %v1629_v19  ;;  %v1630_v37 = vunpack.i.l.bf16 %v1629_v19 }
 0x250   : > { %v1634_v34 = vpop.permute.xlu0 %1633 }
 0x251   : > { %v1636_v38 = vunpack.i.h.bf16 %v1634_v34  ;;  %v1635_v39 = vunpack.i.l.bf16 %v1634_v34 }
 0x252   : > { %v1644_v42 = vpop.permute.xlu1 %1643 }
 0x253   : > { %v636_v44 = vsel %vm352_vm1, %v1636_v38, %v1631_v36  ;;  %v635_v47 = vsel %vm352_vm1, %v1635_v39, %v1630_v37  ;;  %v1646_v60 = vunpack.i.h.bf16 %v1644_v42  ;;  %v1645_v61 = vunpack.i.l.bf16 %v1644_v42 }
 0x254   : > { %v1639_v49 = vpop.permute.xlu0 %1638  ;;  %v1702_v51 = vpack.i.bf16 %v636_v44, %v634_v43  ;;  %v1697_v52 = vpack.i.bf16 %v635_v47, %v633_v45 }
 0x255   : > { %v1641_v55 = vunpack.i.h.bf16 %v1639_v49  ;;  %v1640_v56 = vunpack.i.l.bf16 %v1639_v49 }
 0x256   : > { %v1654_v57 = vpop.permute.xlu1 %1653  ;;  %1703 = vrot.lane.b32.xlu0 %v1702_v51, %s1861_s28  ;;  %1698 = vrot.lane.b32.xlu1 %v1697_v52, %s1861_s28 }
 0x257   : > { %v676_v62 = vsel %vm629_vm5, %v674_v58, %v1641_v55  ;;  %v675_v63 = vsel %vm629_vm5, %v673_v59, %v1640_v56  ;;  %v1656_v3 = vunpack.i.h.bf16 %v1654_v57  ;;  %v1655_v4 = vunpack.i.l.bf16 %v1654_v57 }
 0x258   : > { %v1649_v2 = vpop.permute.xlu0 %1648  ;;  %v677_v11 = vsel %vm632_vm6, %v675_v63, %v1645_v61  ;;  %v678_v13 = vsel %vm632_vm6, %v676_v62, %v1646_v60 }
 0x259   : > { %v1651_v6 = vunpack.i.h.bf16 %v1649_v2  ;;  %v1650_v10 = vunpack.i.l.bf16 %v1649_v2 }
 0x25a   : > { %1708 = vrot.lane.b32.xlu0 %v2013_v48, %s1867_s17  ;;  %1713 = vrot.lane.b32.xlu1 %v2009_v46, %s1869_s21  ;;  %v1664_v17 = vpop.permute.xlu1 %1663 }
 0x25b   : > { %v679_v12 = vsel %vm352_vm1, %v1650_v10, %v1655_v4  ;;  %v680_v14 = vsel %vm352_vm1, %v1651_v6, %v1656_v3  ;;  %v1666_v37 = vunpack.i.h.bf16 %v1664_v17  ;;  %v1665_v38 = vunpack.i.l.bf16 %v1664_v17 }
 0x25c   : > { %v1717_v15 = vpack.i.bf16 %v679_v12, %v677_v11  ;;  %v1722_v16 = vpack.i.bf16 %v680_v14, %v678_v13  ;;  %v1659_v18 = vpop.permute.xlu0 %1658 }
 0x25d   : > { %v1661_v21 = vunpack.i.h.bf16 %v1659_v18  ;;  %v1660_v22 = vunpack.i.l.bf16 %v1659_v18 }
 0x25e   : > { %1718 = vrot.lane.b32.xlu0 %v1717_v15, %s1861_s28  ;;  %1723 = vrot.lane.b32.xlu1 %v1722_v16, %s1861_s28  ;;  %v1679_v48 = vpop.permute.xlu1 %1678 }
 0x25f   : > { %v538_v24 = vsel %vm341_vm2, %v2004_v35, %v1661_v21  ;;  %v537_v25 = vsel %vm341_vm2, %v1998_v32, %v1660_v22  ;;  %v1681_v42 = vunpack.i.h.bf16 %v1679_v48  ;;  %v1680_v43 = vunpack.i.l.bf16 %v1679_v48 }
 0x260   : > { %v1669_v19 = vpop.permute.xlu0 %1668  ;;  %v539_v44 = vsel %vm363_vm3, %v537_v25, %v1665_v38  ;;  %v540_v45 = vsel %vm363_vm3, %v538_v24, %v1666_v37 }
 0x261   : > { %v1671_v34 = vunpack.i.h.bf16 %v1669_v19  ;;  %v1670_v36 = vunpack.i.l.bf16 %v1669_v19  ;;  %v582_v53 = vsel %vm341_vm2, %v1681_v42, %v2000_v33  ;;  %v581_v54 = vsel %vm341_vm2, %v1680_v43, %v1996_v31 }
 0x262   : > { %v1689_v20 = vpop.permute.xlu1 %1688 }
 0x263   : > { %v542_v47 = vsel %vm541_vm7, %v539_v44, %v1670_v36  ;;  %v543_v35 = vsel %vm541_vm7, %v540_v45, %v1671_v34  ;;  %v1691_v11 = vunpack.i.h.bf16 %v1689_v20  ;;  %v1690_v12 = vunpack.i.l.bf16 %v1689_v20 }
 0x264   : > { %v1674_v46 = vpop.permute.xlu0 %1673 }
 0x265   : > { %v1676_v55 = vunpack.i.h.bf16 %v1674_v46  ;;  %v1675_v56 = vunpack.i.l.bf16 %v1674_v46 }
 0x266   : > { %v1694_v23 = vpop.permute.xlu1 %1693 }
 0x267   : > { %v1696_v39 = vunpack.i.h.bf16 %v1694_v23  ;;  %v1695_v40 = vunpack.i.l.bf16 %v1694_v23 }
 0x268   : > { %v1684_v41 = vpop.permute.xlu0 %1683 }
 0x269   : > { %v1686_v49 = vunpack.i.h.bf16 %v1684_v41  ;;  %v1685_v32 = vunpack.i.l.bf16 %v1684_v41  ;;  %v544_v51 = vsel %vm397_vm0, %v542_v47, %v1695_v40  ;;  %v545_v52 = vsel %vm397_vm0, %v543_v35, %v1696_v39  ;;  %v1475_v47 = vld [vmem:[%s2357_s5] ss:$0 sm:$0xff] }
 0x26a   : > { %v2125_v3 = vsel %vm546_vm8, %v545_v52, %v1676_v55  ;;  %v2128_v33 = vsel %vm546_vm8, %v544_v51, %v1675_v56 }
 0x26b   : > { %v584_v63 = vsel %vm363_vm3, %v582_v53, %v1686_v49  ;;  %v583_v2 = vsel %vm363_vm3, %v581_v54, %v1685_v32 }
 0x26c   : > { %v585_v48 = vsel %vm541_vm7, %v583_v2, %v1690_v12  ;;  %v586_v19 = vsel %vm541_vm7, %v584_v63, %v1691_v11 }
 0x2c8   : > { %v1704_v57 = vpop.permute.xlu0 %1703  ;;  %v1699_v58 = vpop.permute.xlu1 %1698 }
 0x2c9   : > { %v1706_v59 = vunpack.i.h.bf16 %v1704_v57  ;;  %v1705_v60 = vunpack.i.l.bf16 %v1704_v57  ;;  %v1701_v61 = vunpack.i.h.bf16 %v1699_v58  ;;  %v1700_v62 = vunpack.i.l.bf16 %v1699_v58 }
 0x2cb   : > { %v707_v31 = vsel %vm705_vm9, %v1705_v60, %v1706_v59  ;;  %v719_v4 = vsel %vm705_vm9, %v2125_v3, %v1705_v60  ;;  %v706_v6 = vsel %vm705_vm9, %v1700_v62, %v1701_v61  ;;  %v718_v10 = vsel %vm705_vm9, %v2128_v33, %v1700_v62 }
 0x2cc   : > { %v722_v13 = vpack.c.bf16 %v719_v4, %v718_v10  ;;  %v723_v14 = vpack.c.bf16 %v707_v31, %v706_v6  ;;  %v1709_v15 = vpop.permute.xlu0 %1708  ;;  %v1714_v16 = vpop.permute.xlu1 %1713 }
 0x2cd   : > { %v1711_v17 = vunpack.i.h.bf16 %v1709_v15  ;;  %v1710_v18 = vunpack.i.l.bf16 %v1709_v15  ;;  %v1716_v46 = vunpack.i.h.bf16 %v1714_v16  ;;  %v1715_v21 = vunpack.i.l.bf16 %v1714_v16 }
 0x2ce   : > { %1490 = vmatprep.mubr.msk.bf16.mxu1 %vm841_vm10, %v723_v14 }
 0x2cf   : > { %v588_v22 = vsel %vm397_vm0, %v586_v19, %v1711_v17  ;;  %v587_v23 = vsel %vm397_vm0, %v585_v48, %v1710_v18  ;;  %885 = vmatmul.mubr.bf16.vlgmr.msra.gmra.mxu1 %v722_v13 }
 0x2d0   : > { %v1719_v20 = vpop.permute.xlu0 %1718  ;;  %v1724_v24 = vpop.permute.xlu1 %1723  ;;  %v2142_v38 = vsel %vm546_vm8, %v588_v22, %v1716_v46  ;;  %v2145_v39 = vsel %vm546_vm8, %v587_v23, %v1715_v21 }
 0x2d1   : > { %v1721_v25 = vunpack.i.h.bf16 %v1719_v20  ;;  %v1720_v34 = vunpack.i.l.bf16 %v1719_v20  ;;  %v1726_v36 = vunpack.i.h.bf16 %v1724_v24  ;;  %v1725_v37 = vunpack.i.l.bf16 %v1724_v24 }
 0x2d3   : > { %v708_v40 = vsel %vm705_vm9, %v1720_v34, %v1721_v25  ;;  %v709_v41 = vsel %vm705_vm9, %v1725_v37, %v1726_v36  ;;  %v720_v42 = vsel %vm705_vm9, %v2145_v39, %v1720_v34  ;;  %v721_v43 = vsel %vm705_vm9, %v2142_v38, %v1725_v37 }
 0x2d4   : > { %v725_v44 = vpack.c.bf16 %v709_v41, %v708_v40  ;;  %v724_v45 = vpack.c.bf16 %v721_v43, %v720_v42 }
 0x2d6   : > { %1491 = vmatprep.mubr.msk.bf16.mxu1 %vm841_vm10, %v725_v44 }
 0x2d7   : > { %893 = vmatmul.mubr.bf16.gmra.mxu1 %v724_v45 }
 0x38f   : > { %v886_v35 = vpop.f32.mrf.mxu1 }
 0x390   : > { %v887_v49 = vadd.f32 %v1475_v47, %v886_v35 }
 0x391   : > { %v888_v32 = vpop.f32.mrf.mxu1 }
 0x392   : > { %v1492_v13 = vmul.f32 -1.442695, %v887_v49  ;;  %v1812_v32 = vld [vmem:[%s2356_s4 + $0x38] sm:$0xff]  }
 0x393   : > { %v889_v51 = vpop.f32.mrf.mxu1 }
 0x394   : > { %v890_v52 = vadd.f32 %v1475_v47, %v889_v51  ;;  %v1813_v51 = vld [vmem:[%s2356_s4 + $0x30] sm:$0xff]  }
 0x395   : > { %v891_v53 = vpop.f32.mrf.mxu1 }
 0x396   : > { %v1493_v14 = vmul.f32 -1.442695, %v890_v52  ;;  %v1814_v52 = vld [vmem:[%s2356_s4 + $0x28] sm:$0xff]   ;;  %v1815_v53 = vld [vmem:[%s2356_s4 + $0x20] sm:$0xff]  }
 0x397   : > { %v894_v54 = vpop.f32.mrf.mxu1 }
 0x398   : > { %v895_v55 = vadd.f32 %v1475_v47, %v894_v54  ;;  %v1816_v54 = vld [vmem:[%s2356_s4 + $0x18] sm:$0xff]  }
 0x399   : > { %v896_v56 = vpop.f32.mrf.mxu1 }
 0x39a   : > { %v1494_v57 = vmul.f32 -1.442695, %v895_v55  ;;  %v1817_v55 = vld [vmem:[%s2356_s4 + $0x10] sm:$0xff]   ;;  %v1818_v56 = vld [vmem:[%s2356_s4 + $0x8] sm:$0xff]  }
 0x39b   : > { %v897_v58 = vpop.f32.mrf.mxu1 }
 0x39c   : > { %1826 = vpow2.f32 %v1494_v57  ;;  %v898_v59 = vadd.f32 %v1475_v47, %v897_v58  ;;  %v1819_v57 = vld [vmem:[%s2356_s4] sm:$0xff]   ;;  %v1820_v58 = vld [vmem:[%s2356_s4 + $0x68] ss:$0 sps:$4 sm:$0xff]  }
 0x39d   : > { %v899_v60 = vpop.f32.mrf.mxu1 }
 0x39e   : > { %v1495_v61 = vmul.f32 -1.442695, %v898_v59  ;;  %v1263_v59 = vsel %vm848_vm4, %v1820_v58, 0  ;;  %v1821_v60 = vld [vmem:[%s2356_s4 + $0x60] sm:$0xff]  }
 0x3a0   : > { %1828 = vpow2.f32 %v1495_v61  ;;  %v1822_v61 = vld [vmem:[%s2356_s4 + $0x58] sm:$0xff]  }
 0x3a9   : > { %v1827_v62 = vpop.eup %1826 }
 0x3aa   : > { %v915_v63 = vadd.f32 1.0, %v1827_v62  ;;  %v1823_v62 = vld [vmem:[%s2356_s4 + $0x50] sm:$0xff]  }
 0x3ac   : > { %1830 = vrcp.f32 %v915_v63  ;;  %v1824_v63 = vld [vmem:[%s2356_s4 + $0x48] sm:$0xff]  }
 0x3ad   : > { %v1829_v2 = vpop.eup %1828 }
 0x3ae   : > { %v916_v31 = vadd.f32 1.0, %v1829_v2 }
 0x3b0   : > { %1832 = vrcp.f32 %v916_v31 }
 0x3b1   : > { %1834 = vpow2.f32 %v1492_v13 }
 0x3b2   : > { %1836 = vpow2.f32 %v1493_v14 }
 0x3b9   : > { %v2157_v4 = vpop.eup %1830 }
 0x3ba   : > { %v927_v10 = vmul.f32 %v2157_v4, %v1928_v0 }
 0x3bd   : > { %v2159_v6 = vpop.eup %1832 }
 0x3be   : > { %v928_v11 = vmul.f32 %v2159_v6, %v1932_v1  ;;  %v1835_v15 = vpop.eup %1834 }
 0x3bf   : > { %v1837_v16 = vpop.eup %1836  ;;  %v913_v17 = vadd.f32 1.0, %v1835_v15 }
 0x3c0   : > { %v1727_v12 = vpack.i.bf16 %v928_v11, %v927_v10  ;;  %v914_v18 = vadd.f32 1.0, %v1837_v16  ;;  %v1825_v11 = vld [vmem:[%s2356_s4 + $0x40] sm:$0xff]  }
 0x3c1   : > { %1838 = vrcp.f32 %v913_v17 }
 0x3c2   : > { %1728 = vrot.lane.b32.xlu0 %v1727_v12, %s1858_s11  ;;  %1840 = vrcp.f32 %v914_v18 }
 0x3ce   : > { %v2166_v48 = vpop.eup %1838 }
 0x3cf   : > { %v2168_v19 = vpop.eup %1840  ;;  %v925_v21 = vmul.f32 %v2166_v48, %v1942_v7 }
 0x3d0   : > { %v926_v22 = vmul.f32 %v2168_v19, %v1944_v8 }
 0x434   : > { %v1729_v0 = vpop.permute.xlu0 %1728 }
 0x435   : > { %v1731_v46 = vunpack.i.h.bf16 %v1729_v0  ;;  %v1730_v1 = vunpack.i.l.bf16 %v1729_v0 }
 0x437   : > { %v937_v23 = vsel %vm352_vm1, %v925_v21, %v1730_v1  ;;  %v938_v20 = vsel %vm352_vm1, %v926_v22, %v1731_v46 }
 0x438   : > { %v939_v24 = vpack.c.bf16 %v938_v20, %v937_v23 }
 0x43a   : > { %1551 = vmatprep.subr.bf16.mxu0 %v939_v24 }
 0x43b   : > { %1552 = vmatpush3.bf16.msra.mxu0 %v939_v24 }
 0x43c   : > { %1265 = vmatprep.subr.bf16.mxu0 %v1866_v50 }
 0x43e   : > { %1554 = vmatmul.mubr.msk.bf16.vlgmr.msra.gmra.mxu0 %vm397_vm0, %v1964_v26 }
 0x43f   : > { %1557 = vmatprep.mubr.msk.bf16.mxu0 %vm397_vm0, %v1969_v27  ;;  %1266 = vmatpush1.bf16.msra.mxu0 %v1812_v32 }
 0x440   : > { %1267 = vmatprep.subr.bf16.mxu0 %v1866_v50 }
 0x443   : > { %1268 = vmatpush1.bf16.msra.mxu0 %v1813_v51 }
 0x444   : > { %1269 = vmatprep.subr.bf16.mxu0 %v1866_v50 }
 0x446   : > { %1558 = vmatmul.mubr.msk.bf16.gmra.mxu0 %vm397_vm0, %v1978_v28 }
 0x447   : > { %1561 = vmatprep.mubr.msk.bf16.mxu0 %vm397_vm0, %v1983_v29  ;;  %1270 = vmatpush1.bf16.msra.mxu0 %v1814_v52 }
 0x448   : > { %1271 = vmatprep.subr.bf16.mxu0 %v1866_v50 }
 0x44b   : > { %1272 = vmatpush1.bf16.msra.mxu0 %v1815_v53 }
 0x44c   : > { %1273 = vmatprep.subr.bf16.mxu0 %v1866_v50 }
 0x44e   : > { %1562 = vmatmul.mubr.msk.bf16.gmra.mxu0 %vm397_vm0, %v1992_v30 }
 0x44f   : > { %1274 = vmatpush1.bf16.msra.mxu0 %v1816_v54 }
 0x450   : > { %1275 = vmatprep.subr.bf16.mxu0 %v1866_v50 }
 0x453   : > { %1276 = vmatpush1.bf16.msra.mxu0 %v1817_v55 }
 0x454   : > { %1277 = vmatprep.subr.bf16.mxu0 %v1866_v50 }
 0x457   : > { %1278 = vmatpush1.bf16.msra.mxu0 %v1818_v56 }
 0x458   : > { %1279 = vmatprep.subr.bf16.mxu0 %v1866_v50 }
 0x45b   : > { %1280 = vmatpush1.bf16.msra.mxu0 %v1819_v57 }
 0x45c   : > { %1285 = vmatprep.subr.bf16.mxu0 %v1866_v50 }
 0x45f   : > { %1286 = vmatpush2.bf16.msra.mxu0 %v1263_v59 }
 0x460   : > { %1287 = vmatprep.subr.bf16.mxu0 %v1866_v50 }
 0x463   : > { %1288 = vmatpush2.bf16.msra.mxu0 %v1821_v60 }
 0x464   : > { %1289 = vmatprep.subr.bf16.mxu0 %v1866_v50 }
 0x467   : > { %1290 = vmatpush2.bf16.msra.mxu0 %v1822_v61 }
 0x468   : > { %1291 = vmatprep.subr.bf16.mxu0 %v1866_v50 }
 0x46b   : > { %1292 = vmatpush2.bf16.msra.mxu0 %v1823_v62 }
 0x46c   : > { %1293 = vmatprep.subr.bf16.mxu0 %v1866_v50 }
 0x46f   : > { %1294 = vmatpush2.bf16.msra.mxu0 %v1824_v63 }
 0x470   : > { %1295 = vmatprep.subr.bf16.mxu0 %v1866_v50 }
 0x473   : > { %1296 = vmatpush2.bf16.msra.mxu0 %v1825_v11 }
 0x4fe   : > { %v2187_v25 = vpop.f32.mrf.mxu0 }
 0x500   : > { %v2189_v34 = vpop.f32.mrf.mxu0 }
 0x502   : > { %v2191_v36 = vpop.f32.mrf.mxu0 }
 0x503   : > { %v1732_v26 = vpack.i.bf16 %v2191_v36, %v2187_v25 }
 0x504   : > { %v2195_v37 = vpop.f32.mrf.mxu0 }
 0x505   : > { %1733 = vrot.lane.b32.xlu1 %v1732_v26, %s1858_s11  ;;  %v1742_v43 = vpack.i.bf16 %v2195_v37, %v2189_v34 }
 0x506   : > { %v1559_v27 = vpop.f32.mrf.mxu0 }
 0x508   : > { %v990_v28 = vpop.f32.mrf.mxu0 }
 0x50a   : > { %v1560_v40 = vpop.f32.mrf.mxu0 }
 0x50b   : > { %v1737_v29 = vpack.i.bf16 %v1560_v40, %v1559_v27 }
 0x50c   : > { %v993_v41 = vpop.f32.mrf.mxu0 }
 0x50d   : > { %v1747_v42 = vpack.i.bf16 %v993_v41, %v990_v28  ;;  %1738 = vrot.lane.b32.xlu1 %v1737_v29, %s1870_s29 }
 0x50e   : > { %v2199_v30 = vpop.f32.mrf.mxu0 }
 0x50f   : > { %1748 = vrot.lane.b32.xlu0 %v1747_v42, %s1871_s30 }
 0x510   : > { %v2203_v44 = vpop.f32.mrf.mxu0 }
 0x511   : > { %1743 = vrot.lane.b32.xlu1 %v1742_v43, %s1870_s29 }
 0x512   : > { %v2206_v45 = vpop.f32.mrf.mxu0 }
 0x513   : > { %v1752_v47 = vpack.i.bf16 %v2206_v45, %v2199_v30 }
 0x514   : > { %v2211_v35 = vpop.f32.mrf.mxu0 }
 0x515   : > { %1763 = vrot.lane.b32.xlu1 %v1737_v29, %s1871_s30  ;;  %1753 = vrot.lane.b32.xlu0 %v1752_v47, %s1858_s11  ;;  %v1767_v49 = vpack.i.bf16 %v2211_v35, %v2203_v44 }
 0x519   : > { %1758 = vrot.lane.b32.xlu0 %v1747_v42, %s1858_s11 }
 0x51d   : > { %1768 = vrot.lane.b32.xlu0 %v1767_v49, %s1870_s29 }
 0x577   : > { %v1734_v2 = vpop.permute.xlu1 %1733 }
 0x578   : > { %v1736_v12 = vunpack.i.h.bf16 %v1734_v2  ;;  %v1735_v13 = vunpack.i.l.bf16 %v1734_v2 }
 0x57a   : > { %v1053_v16 = vsel %vm352_vm1, %v2189_v34, %v1735_v13  ;;  %v1054_v17 = vsel %vm352_vm1, %v2195_v37, %v1736_v12 }
 0x57f   : > { %v1739_v31 = vpop.permute.xlu1 %1738 }
 0x580   : > { %v1741_v1 = vunpack.i.h.bf16 %v1739_v31  ;;  %v1740_v21 = vunpack.i.l.bf16 %v1739_v31 }
 0x581   : > { %v1749_v10 = vpop.permute.xlu0 %1748 }
 0x582   : > { %v1751_v14 = vunpack.i.h.bf16 %v1749_v10  ;;  %v1750_v15 = vunpack.i.l.bf16 %v1749_v10 }
 0x583   : > { %v1744_v18 = vpop.permute.xlu1 %1743 }
 0x584   : > { %v1056_v50 = vsel %vm629_vm5, %v1054_v17, %v1751_v14  ;;  %v1055_v0 = vsel %vm629_vm5, %v1053_v16, %v1750_v15  ;;  %v1746_v20 = vunpack.i.h.bf16 %v1744_v18  ;;  %v1745_v24 = vunpack.i.l.bf16 %v1744_v18 }
 0x585   : > { %v1057_v26 = vsel %vm632_vm6, %v1055_v0, %v1740_v21  ;;  %v1058_v27 = vsel %vm632_vm6, %v1056_v50, %v1741_v1 }
 0x586   : > { %v1090_v47 = vsel %vm352_vm1, %v1746_v20, %v2191_v36 }
 0x587   : > { %v1754_v46 = vpop.permute.xlu0 %1753  ;;  %v1764_v43 = vpop.permute.xlu1 %1763 }
 0x588   : > { %v1756_v22 = vunpack.i.h.bf16 %v1754_v46  ;;  %v1755_v23 = vunpack.i.l.bf16 %v1754_v46  ;;  %v1766_v51 = vunpack.i.h.bf16 %v1764_v43  ;;  %v1765_v52 = vunpack.i.l.bf16 %v1764_v43  ;;  %v1502_v46 = vld [vmem:[%s2358_s6] ss:$0 sm:$0xff] }
 0x589   : > { %v1330_v43 = vsub.f32 1.0, %v2166_v48 }
 0x58a   : > { %v1059_v34 = vsel %vm352_vm1, %v2203_v44, %v1755_v23  ;;  %v1060_v37 = vsel %vm352_vm1, %v2211_v35, %v1756_v22  ;;  %v1089_v44 = vsel %vm352_vm1, %v1745_v24, %v2187_v25 }
 0x58b   : > { %v1759_v28 = vpop.permute.xlu0 %1758  ;;  %v1772_v40 = vpack.i.bf16 %v1059_v34, %v1057_v26  ;;  %v1777_v29 = vpack.i.bf16 %v1060_v37, %v1058_v27 }
 0x58c   : > { %v1761_v41 = vunpack.i.h.bf16 %v1759_v28  ;;  %v1760_v42 = vunpack.i.l.bf16 %v1759_v28 }
 0x58d   : > { %1773 = vrot.lane.b32.xlu1 %v1772_v40, %s1861_s28  ;;  %1778 = vrot.lane.b32.xlu0 %v1777_v29, %s1861_s28 }
 0x58e   : > { %v1092_v49 = vsel %vm629_vm5, %v1090_v47, %v1761_v41  ;;  %v1091_v35 = vsel %vm629_vm5, %v1089_v44, %v1760_v42 }
 0x58f   : > { %v1769_v32 = vpop.permute.xlu0 %1768  ;;  %v1093_v55 = vsel %vm632_vm6, %v1091_v35, %v1765_v52  ;;  %v1094_v57 = vsel %vm632_vm6, %v1092_v49, %v1766_v51  ;;  %v1331_v51 = vsub.f32 1.0, %v2168_v19 }
 0x590   : > { %v1771_v53 = vunpack.i.h.bf16 %v1769_v32  ;;  %v1770_v54 = vunpack.i.l.bf16 %v1769_v32 }
 0x592   : > { %v1095_v56 = vsel %vm352_vm1, %v1770_v54, %v2199_v30  ;;  %v1096_v36 = vsel %vm352_vm1, %v1771_v53, %v2206_v45 }
 0x593   : > { %v1782_v25 = vpack.i.bf16 %v1095_v56, %v1093_v55  ;;  %v1787_v58 = vpack.i.bf16 %v1096_v36, %v1094_v57  ;;  %v1332_v56 = vsub.f32 1.0, %v2157_v4  ;;  %v1328_v36 = vmul.f32 %v2157_v4, %v1937_v5 }
 0x595   : > { %1783 = vrot.lane.b32.xlu1 %v1782_v25, %s1861_s28  ;;  %1788 = vrot.lane.b32.xlu0 %v1787_v58, %s1861_s28  ;;  %v1333_v58 = vsub.f32 1.0, %v2159_v6 }
 0x599   : > { %1320 = vrot.lane.b32.xlu1 %v1942_v7, %s1858_s11 }
 0x59d   : > { %1322 = vrot.lane.b32.xlu1 %v1944_v8, %s1858_s11 }
 0x5ff   : > { %v1774_v59 = vpop.permute.xlu1 %1773  ;;  %v1779_v60 = vpop.permute.xlu0 %1778 }
 0x600   : > { %v1776_v30 = vunpack.i.h.bf16 %v1774_v59  ;;  %v1775_v61 = vunpack.i.l.bf16 %v1774_v59  ;;  %v1781_v62 = vunpack.i.h.bf16 %v1779_v60  ;;  %v1780_v63 = vunpack.i.l.bf16 %v1779_v60 }
 0x602   : > { %v1121_v45 = vsel %vm705_vm9, %v1775_v61, %v1776_v30  ;;  %v1133_v2 = vsel %vm705_vm9, %v2128_v33, %v1775_v61  ;;  %v1122_v31 = vsel %vm705_vm9, %v1780_v63, %v1781_v62  ;;  %v1134_v10 = vsel %vm705_vm9, %v2125_v3, %v1780_v63 }
 0x603   : > { %v1137_v7 = vpack.c.bf16 %v1134_v10, %v1133_v2  ;;  %v1138_v11 = vpack.c.bf16 %v1122_v31, %v1121_v45 }
 0x605   : > { %1517 = vmatprep.mubr.msk.bf16.mxu0 %vm841_vm10, %v1138_v11 }
 0x606   : > { %1298 = vmatmul.mubr.bf16.vlgmr.msra.gmra.mxu0 %v1137_v7 }
 0x607   : > { %v1784_v8 = vpop.permute.xlu1 %1783  ;;  %v1789_v12 = vpop.permute.xlu0 %1788 }
 0x608   : > { %v1786_v13 = vunpack.i.h.bf16 %v1784_v8  ;;  %v1785_v14 = vunpack.i.l.bf16 %v1784_v8  ;;  %v1791_v15 = vunpack.i.h.bf16 %v1789_v12  ;;  %v1790_v16 = vunpack.i.l.bf16 %v1789_v12 }
 0x60a   : > { %v1123_v17 = vsel %vm705_vm9, %v1785_v14, %v1786_v13  ;;  %v1124_v33 = vsel %vm705_vm9, %v1790_v16, %v1791_v15  ;;  %v1135_v18 = vsel %vm705_vm9, %v2145_v39, %v1785_v14  ;;  %v1136_v3 = vsel %vm705_vm9, %v2142_v38, %v1790_v16 }
 0x60b   : > { %v1140_v50 = vpack.c.bf16 %v1124_v33, %v1123_v17  ;;  %v1139_v0 = vpack.c.bf16 %v1136_v3, %v1135_v18  ;;  %v1321_v42 = vpop.permute.xlu1 %1320 }
 0x60c   : > { %v1326_v44 = vmul.f32 %v2166_v48, %v1321_v42 }
 0x60d   : > { %1518 = vmatprep.mubr.msk.bf16.mxu0 %vm841_vm10, %v1140_v50 }
 0x60e   : > { %1306 = vmatmul.mubr.bf16.gmra.mxu0 %v1139_v0 }
 0x60f   : > { %v1323_v35 = vpop.permute.xlu1 %1322 }
 0x610   : > { %v1327_v53 = vmul.f32 %v2168_v19, %v1323_v35  ;;  %v1329_v19 = vmul.f32 %v2159_v6, %v1948_v9 }
 0x6c6   : > { %v1299_v1 = vpop.f32.mrf.mxu0 }
 0x6c7   : > { %v1300_v21 = vadd.f32 %v1502_v46, %v1299_v1 }
 0x6c8   : > { %v1301_v22 = vpop.f32.mrf.mxu0 }
 0x6c9   : > { %1842 = vtanh.f32 %v1300_v21 }
 0x6ca   : > { %v1302_v23 = vpop.f32.mrf.mxu0 }
 0x6cb   : > { %v1303_v20 = vadd.f32 %v1502_v46, %v1302_v23 }
 0x6cc   : > { %v1304_v24 = vpop.f32.mrf.mxu0 }
 0x6cd   : > { %1844 = vtanh.f32 %v1303_v20 }
 0x6ce   : > { %v1307_v39 = vpop.f32.mrf.mxu0 }
 0x6cf   : > { %v1308_v26 = vadd.f32 %v1502_v46, %v1307_v39 }
 0x6d0   : > { %v1309_v38 = vpop.f32.mrf.mxu0 }
 0x6d1   : > { %1846 = vtanh.f32 %v1308_v26 }
 0x6d2   : > { %v1310_v34 = vpop.f32.mrf.mxu0 }
 0x6d3   : > { %v1311_v27 = vadd.f32 %v1502_v46, %v1310_v34 }
 0x6d4   : > { %v1312_v37 = vpop.f32.mrf.mxu0 }
 0x6d5   : > { %1848 = vtanh.f32 %v1311_v27 }
 0x6d6   : > { %v1843_v28 = vpop.eup %1842 }
 0x6d7   : > { %1338 = vrot.lane.b32.xlu0 %v1843_v28, %s1858_s11 }
 0x6da   : > { %v1845_v40 = vpop.eup %1844 }
 0x6db   : > { %1340 = vrot.lane.b32.xlu0 %v1845_v40, %s1858_s11 }
 0x6de   : > { %v1847_v29 = vpop.eup %1846 }
 0x6df   : > { %1342 = vrot.lane.b32.xlu1 %v1847_v29, %s1858_s11 }
 0x6e2   : > { %v1849_v41 = vpop.eup %1848 }
 0x6e3   : > { %1344 = vrot.lane.b32.xlu0 %v1849_v41, %s1858_s11  ;;  %s1457_s11 = sshll.u32 %s1446_s25, 2 }
 0x6e4   : > { %p305_p4 = scmp.lt.s32.totalorder %s1457_s11, 7 }
 0x6e6   : > { %s2363_s11 = smov (!%p305_p4, %s1457_s11), 7 }
 0x6e7   : > { %s1458_s23 = sshll.u32 %s2363_s11, 3 }
 0x6e8   : > { %s308_s27 = scalar_lea.vmem %s2359_s7, %s1458_s23 }
 0x749   : > { %v1339_v47 = vpop.permute.xlu0 %1338 }
 0x74a   : > { %v1350_v49 = vmul.f32 %v1339_v47, %v1330_v43 }
 0x74c   : > { %v1354_v32 = vadd.f32 %v1350_v49, %v1326_v44 }
 0x74d   : > { %v1341_v52 = vpop.permute.xlu0 %1340 }
 0x74e   : > { %v1351_v54 = vmul.f32 %v1341_v52, %v1331_v51  ;;  %1362 = vrot.lane.b32.xlu1 %v1354_v32, %s1870_s29 }
 0x750   : > { %v1355_v55 = vadd.f32 %v1351_v54, %v1327_v53 }
 0x751   : > { %v1343_v57 = vpop.permute.xlu1 %1342 }
 0x752   : > { %v1352_v48 = vmul.f32 %v1343_v57, %v1332_v56  ;;  %1364 = vrot.lane.b32.xlu0 %v1355_v55, %s1870_s29 }
 0x754   : > { %v1356_v25 = vadd.f32 %v1352_v48, %v1328_v36 }
 0x755   : > { %v1345_v59 = vpop.permute.xlu0 %1344 }
 0x756   : > { %v1353_v60 = vmul.f32 %v1345_v59, %v1333_v58  ;;  %1366 = vrot.lane.b32.xlu1 %v1356_v25, %s1870_s29 }
 0x758   : > { %v1357_v30 = vadd.f32 %v1353_v60, %v1329_v19 }
 0x75a   : > { %1368 = vrot.lane.b32.xlu0 %v1357_v30, %s1870_s29 }
 0x7c0   : > { %v1363_v5 = vpop.permute.xlu1 %1362 }
 0x7c1   : > { %1374 = vst.msk [vmem:[%s308_s27] sm:$0xff] %vm352_vm1, %v1363_v5 }
 0x7c4   : > { %v1365_v4 = vpop.permute.xlu0 %1364 }
 0x7c5   : > { %1375 = vst.msk [vmem:[%s308_s27 + $0x8] sm:$0xff] %vm352_vm1, %v1365_v4 }
 0x7c8   : > { %v1367_v9 = vpop.permute.xlu1 %1366 }
 0x7c9   : > { %1376 = vst.msk [vmem:[%s308_s27 + $0x10] sm:$0xff] %vm352_vm1, %v1367_v9 }
 0x7cc   : > { %v1369_v6 = vpop.permute.xlu0 %1368 }
 0x7cd   : > { %1377 = vst.msk [vmem:[%s308_s27 + $0x18] sm:$0xff] %vm352_vm1, %v1369_v6 }
 0x7ce PF: > { %s17_s24 = sadd.s32 1, %s1856_s24  }
 0x7cf   : > { %p14_p5 = scmp.ge.s32.totalorder %s17_s24, 4  }
 0x7d1   :  { %16 = sbr.rel (!%p14_p5) target bundleno = 1 (0x1), region = 83 }

</bundles_post_ra>
